<compile_context>
chip_gen: v7x
topology: tpu7x:2x2x1
jax: 0.10.0
libtpu: 0.0.40
codegen_flags: <defaults>
</compile_context>

<pallas_src>
import jax
import jax.numpy as jnp
from jax.experimental import pallas as pl
from jax.experimental.pallas import tpu as pltpu


def _conv_bn_relu_kernel(p_ref, w_ref, o_ref):
    # p_ref: (TM, Kp)  im2col patch rows; column K holds 1.0 (bias column),
    #                  remaining padding columns are zero.
    # w_ref: (Kp, Np)  BN-scale-folded weights; row K holds the folded BN
    #                  shift (+ conv bias); remaining padding is zero.
    # o_ref: (TM, Np)  lane-dense output tile.
    y = jnp.dot(p_ref[...], w_ref[...], preferred_element_type=jnp.float32)
    o_ref[...] = jnp.maximum(y, 0.0).astype(o_ref.dtype)   # fused ReLU


def _round_up(x, m):
    return (x + m - 1) // m * m


def basic_conv2d(x_nchw, w_oihw, conv_bias, bn_gamma, bn_beta,
                 bn_mean, bn_var, *, stride=1, padding=1, eps=1e-5,
                 tile_m=256, compute_dtype=jnp.float32):
    """Conv2d(stride, padding) + BatchNorm2d(eval) + ReLU, fused on TPU."""
    N, Cin, H, W = x_nchw.shape
    Cout, Cin_w, KH, KW = w_oihw.shape
    assert Cin == Cin_w

    Ho = (H + 2 * padding - KH) // stride + 1
    Wo = (W + 2 * padding - KW) // stride + 1

    # ---- layout plumbing + im2col, done once in XLA (outside the kernel) ----
    x_nhwc = jnp.transpose(x_nchw, (0, 2, 3, 1))
    x_pad = jnp.pad(x_nhwc,
                    ((0, 0), (padding, padding), (padding, padding), (0, 0)))
    taps = []
    for kh in range(KH):
        for kw in range(KW):
            taps.append(x_pad[:,
                              kh:kh + (Ho - 1) * stride + 1:stride,
                              kw:kw + (Wo - 1) * stride + 1:stride, :])
    patches = jnp.concatenate(taps, axis=-1)           # (N, Ho, Wo, KH*KW*Cin)
    K = KH * KW * Cin
    M = N * Ho * Wo
    patches = patches.reshape(M, K)

    # ---- BN folding: scale into weights, bias+mean into a shift vector ------
    scale = bn_gamma / jnp.sqrt(bn_var + eps)           # (Cout,)
    shift = bn_beta + (conv_bias - bn_mean) * scale     # (Cout,)
    w_2d = jnp.transpose(w_oihw, (2, 3, 1, 0)).reshape(K, Cout)   # (K, Cout)
    w_2d = w_2d * scale[None, :]                        # fold BN scale

    # ---- pad to MXU-friendly tiles: K->128, Cout->128, M->multiple of TM ----
    # K+1 <= Kp: column K of the patches is a "ones" column that carries the
    # folded BN shift through the same matmul (free — padding already there).
    Kp = max(128, _round_up(K + 1, 128))
    Np = max(128, _round_up(Cout, 128))
    TM = min(tile_m, max(8, _round_up(M, 8)))
    Mp = _round_up(M, TM)

    patches_p = jnp.zeros((Mp, Kp), compute_dtype)
    patches_p = patches_p.at[:M, :K].set(patches.astype(compute_dtype))
    patches_p = patches_p.at[:M, K].set(jnp.asarray(1.0, compute_dtype))

    w_p = jnp.zeros((Kp, Np), compute_dtype)
    w_p = w_p.at[:K, :Cout].set(w_2d.astype(compute_dtype))
    w_p = w_p.at[K, :Cout].set(shift.astype(compute_dtype))

    grid_m = Mp // TM

    out_flat = pl.pallas_call(
        _conv_bn_relu_kernel,
        out_shape=jax.ShapeDtypeStruct((Mp, Np), x_nchw.dtype),
        grid_spec=pltpu.PrefetchScalarGridSpec(
            num_scalar_prefetch=0,
            grid=(grid_m,),
            in_specs=[
                pl.BlockSpec((TM, Kp), lambda i: (i, 0)),   # patch rows (tiled)
                pl.BlockSpec((Kp, Np), lambda i: (0, 0)),   # weights (resident)
            ],
            out_specs=pl.BlockSpec((TM, Np), lambda i: (i, 0)),
        ),
        compiler_params=pltpu.CompilerParams(
            dimension_semantics=("parallel",)),
    )(patches_p, w_p)

    out = out_flat[:M, :Cout].reshape(N, Ho, Wo, Cout)
    return jnp.transpose(out, (0, 3, 1, 2))              # back to NCHW


def _reference(x_nchw, w_oihw, conv_bias, bn_gamma, bn_beta,
               bn_mean, bn_var, *, stride=1, padding=1, eps=1e-5):
    y = jax.lax.conv_general_dilated(
        x_nchw, w_oihw, window_strides=(stride, stride),
        padding=[(padding, padding), (padding, padding)],
        dimension_numbers=("NCHW", "OIHW", "NCHW"))
    y = y + conv_bias[None, :, None, None]
    y = (y - bn_mean[None, :, None, None]) / jnp.sqrt(
        bn_var[None, :, None, None] + eps)
    y = y * bn_gamma[None, :, None, None] + bn_beta[None, :, None, None]
    return jnp.maximum(y, 0.0)


if __name__ == "__main__":
    # BasicConv2D(in_channels=4, out_channels=8, kernel_size=3, padding=1)
    N, Cin, H, W = 2, 4, 16, 16
    Cout, KH, KW = 8, 3, 3

    key = jax.random.PRNGKey(0)
    k1, k2, k3, k4, k5, k6, k7 = jax.random.split(key, 7)

    x = jax.random.normal(k1, (N, Cin, H, W), jnp.float32)
    conv_w = jax.random.normal(k2, (Cout, Cin, KH, KW), jnp.float32) * 0.1
    conv_b = jax.random.normal(k3, (Cout,), jnp.float32) * 0.1
    bn_gamma = 1.0 + 0.1 * jax.random.normal(k4, (Cout,), jnp.float32)
    bn_beta = 0.1 * jax.random.normal(k5, (Cout,), jnp.float32)
    bn_mean = 0.1 * jax.random.normal(k6, (Cout,), jnp.float32)
    bn_var = jnp.abs(1.0 + 0.1 * jax.random.normal(k7, (Cout,), jnp.float32))

    out = basic_conv2d(x, conv_w, conv_b, bn_gamma, bn_beta, bn_mean, bn_var)
    out = jax.block_until_ready(out)

    ref = _reference(x, conv_w, conv_b, bn_gamma, bn_beta, bn_mean, bn_var)
    assert out.shape == (N, Cout, H, W)
    assert jnp.allclose(out, ref, atol=1e-4, rtol=1e-4)

    print("KERNEL_OK")
</pallas_src>

<mosaic_0001>
module attributes {stable_mosaic.version = 11 : i64} {
  func.func @_conv_bn_relu_kernel(%arg0: i32, %arg1: memref<256x128xf32, #tpu.memory_space<vmem>>, %arg2: memref<128x128xf32, #tpu.memory_space<vmem>>, %arg3: memref<256x128xf32, #tpu.memory_space<vmem>>) attributes {dimension_semantics = [#tpu.dimension_semantics<parallel>], iteration_bounds = array<i64: 2>, scalar_prefetch = 0 : i64, scratch_operands = 0 : i64, tpu.core_type = #tpu.core_type<tc>, window_params = [{transform_indices = @transform_0, window_bounds = array<i64: 256, 128>}, {pipeline_mode = #tpu.pipeline_mode<synchronous>, transform_indices = @transform_1, window_bounds = array<i64: 128, 128>}, {transform_indices = @transform_2, window_bounds = array<i64: 256, 128>}]} {
    %c0 = arith.constant 0 : index
    %c0_0 = arith.constant 0 : index
    %0 = vector.load %arg1[%c0, %c0_0] : memref<256x128xf32, #tpu.memory_space<vmem>>, vector<256x128xf32>
    %c0_1 = arith.constant 0 : index
    %c0_2 = arith.constant 0 : index
    %1 = vector.load %arg2[%c0_1, %c0_2] : memref<128x128xf32, #tpu.memory_space<vmem>>, vector<128x128xf32>
    %cst = arith.constant dense<0.000000e+00> : vector<256x128xf32>
    %2 = tpu.matmul %0, %1, %cst {dimension_numbers = #tpu.dot_dimension_numbers<[1], [0], [0], [1], [0, 0, 1, 1], [], []>} : vector<256x128xf32>, vector<128x128xf32>, vector<256x128xf32> -> vector<256x128xf32>
    %cst_3 = arith.constant 0.000000e+00 : f32
    %3 = vector.broadcast %cst_3 : f32 to vector<256x128xf32>
    %4 = arith.maximumf %2, %3 : vector<256x128xf32>
    %c0_4 = arith.constant 0 : index
    %c0_5 = arith.constant 0 : index
    %5 = vector.load %arg3[%c0_4, %c0_5] : memref<256x128xf32, #tpu.memory_space<vmem>>, vector<256x128xf32>
    tpu.vector_store %arg3[%c0_4, %c0_5], %4 {strides = array<i32>} : memref<256x128xf32, #tpu.memory_space<vmem>>, vector<256x128xf32>,
    return
  }
  func.func @transform_0(%arg0: i32) -> (i32, i32) {
    %c0_i32 = arith.constant 0 : i32
    %c0_i32_0 = arith.constant 0 : i32
    return %arg0, %c0_i32 : i32, i32
  }
  func.func @transform_1(%arg0: i32) -> (i32, i32) {
    %c0_i32 = arith.constant 0 : i32
    %c0_i32_0 = arith.constant 0 : i32
    %c0_i32_1 = arith.constant 0 : i32
    return %c0_i32, %c0_i32_0 : i32, i32
  }
  func.func @transform_2(%arg0: i32) -> (i32, i32) {
    %c0_i32 = arith.constant 0 : i32
    %c0_i32_0 = arith.constant 0 : i32
    return %arg0, %c0_i32 : i32, i32
  }
}

</mosaic_0001>

<bundles_post_ra>
// kernel: tpu_custom_call.1
= control target key start
LH: loop header
LB: loop body
LE: loop exit
PB: predicated region body
PF: predicated region fallthrough
CT: control target
= control target key end

     0   :  { %7 = vsyncpa [#allocation3], 0  ;;  %s1300_s0 = inlined_call_operand.hbm [shape: f32[512,128], index: 0, kind: input, shape index: {}]   ;;  %s1301_s1 = inlined_call_operand.hbm [shape: f32[128,128], index: 1, kind: input, shape index: {}]   ;;  %s1302_s2 = inlined_call_operand.hbm [shape: f32[512,128], index: 2, kind: output, shape index: {}]  }
   0x1   :  { %9 = vsyncpa [#allocation3 + $0x1], 0 }
   0x2   :  { %10 = vsyncpa [#allocation6], 0 }
   0x3   :  { %11 = vsyncpa [#allocation4], 0 }
   0x4   :  { %13 = vsyncpa [#allocation4 + $0x1], 0  ;;  %s1020_s9 = smov 0   ;;  %s1022_s10 = smov 0  }
   0x5   :  { %s1024_s11 = smov 0   ;;  %s1026_s12 = smov 0  }
   0x6 LB: > { %s1041_s13 = sadd.s32 4294967295, %s996_s12   ;;  %s613_s14 = sadd.s32 4294967294, %s996_s12   ;;  %s996_s12 = sphi %s1026_s12, %s1322_s12   ;;  %s992_s11 = sphi %s1024_s11, %s1321_s11   ;;  %s988_s10 = sphi %s1022_s10, %s1320_s10   ;;  %s984_s9 = sphi %s1020_s9, %s1319_s9  }
   0x7   : > { %p39_p0 = scmp.ne.s32.totalorder %s988_s10, %s984_s9  ;;  %p1303_p1 = scmp.eq.s32.totalorder %s1041_s13, 0 }
   0x8   : > { %p90_p3 = scmp.eq.s32.totalorder %s613_s14, 1  ;;  %p614_p5 = scmp.ge.s32.totalorder %s996_s12, 1 }
   0x9   : > { %p1050_p4 = por %p1303_p1, %p39_p0  ;;  %p97_p7 = scmp.lt.s32.totalorder %s996_s12, 3 }
   0xa   : > { %p1055_p6 = por %p90_p3, %p39_p0  ;;  %s998_s18 = smov [#allocation5]  }
   0xb   : > { %s1306_s15 = scalar_select %p1050_p4, 1, 0 }
   0xc   : > { %s1307_s16 = scalar_select %p1055_p6, 1, 0 }
   0xd   : > { %p1060_p8 = pnand %p614_p5, %p97_p7  ;;  %s109_s19 = sshll.u32 %s998_s18, 4  ;;  %s1064_s19 = int_to_ptr.vmem [resolvable:$true] %s109_s19 }
   0xe   : > { %s1076_s21 = sadd.s32 1, %s996_s12   ;;  %s26_s22 = sadd.s32 1, %s992_s11 }
   0xf   : > { %s1308_s17 = scalar_select %p1060_p8, 1, 0 }
  0x10   : > { %p815_p9 = pneg %p1060_p8  ;;  %s23_s23 = ssub.s32 %s996_s12, %s1076_s21 }
  0x11   : > { %s868_s26 = scalar_lea.hbm %s1301_s1, 2048 }
  0x12   : > { %p1071_p11 = pnand %p815_p9, %p1303_p1  ;;  %p869_p12 = scmp.ne.s32.totalorder %s1301_s1, %s868_s26 }
  0x13   : > { %p875_p5 = scmp.lt.u32.totalorder %s868_s26, %s1301_s1 }
  0x14   : > { %p870_p13 = pneg %p1071_p11 }
  0x16   : > { %p871_p0 = pnand %p870_p13, %p869_p12 }
  0x18   : > { %p872_p3 = pneg %p871_p0 }
  0x1a   : > { %p877_p7 = pnand %p875_p5, %p872_p3 }
  0x1c   : > { %880 = shalt.err (!%p877_p7)
}
  0x1d   : > { %s881_s3 = scalar_lea.vmem %s1064_s19, 2048  ;;  %p889_p2 = scmp.lt.s32.totalorder %s1064_s19, %s1064_s19 }
  0x1e   : > { %p882_p9 = scmp.ne.s32.totalorder %s1064_s19, %s881_s3  ;;  %p890_p6 = scmp.lt.s32.totalorder %s881_s3, %s881_s3 }
  0x20   : > { %p884_p10 = pnand %p882_p9, %p870_p13  ;;  %p891_p4 = por %p890_p6, %p889_p2 }
  0x22   : > { %p885_p1 = pneg %p884_p10 }
  0x24   : > { %p892_p8 = pnand %p891_p4, %p885_p1 }
  0x26   : > { %895 = shalt.err (!%p892_p8)
}
  0x27   : > { %s999_s4 = smov 128   ;;  %s1000_s5 = smov 8  }
  0x28   : > { %818 = dma.hbm_to_vmem [thread:$0]  (!%p1071_p11), %s1301_s1, 2048, %s1064_s19, [#allocation6], %s999_s4, %s999_s4, %s1000_s5  }
  0x29   : > { %p24_p1 = scmp.eq.s32.totalorder %s23_s23, 0  ;;  %p33_p2 = scmp.ne.s32.totalorder %s992_s11, %s988_s10 }
  0x2a   : > { %p34_p4 = scmp.eq.s32.totalorder %s996_s12, 0  ;;  %p828_p6 = scmp.lt.s32.totalorder %s996_s12, 2 }
  0x2b   : > { %s1110_s8 = scalar_select %p24_p1, %s992_s11, %s26_s22  }
  0x2c   : > { %p35_p8 = por %p34_p4, %p33_p2  ;;  %p1310_p10 = scmp.eq.s32.totalorder %s1041_s13, 1 }
  0x2d   : > { %s123_s18 = sand.u32 1, %s992_s11   ;;  %s629_s20 = sshll.u32 %s996_s12, 12 }
  0x2e   : > { %p1114_p12 = por %p1310_p10, %p33_p2  ;;  %s617_s24 = sshll.u32 %s123_s18, 8 }
  0x2f   : > { %s1123_s27 = scalar_lea.hbm %s1300_s0, %s629_s20  ;;  %s127_s19 = scalar_lea.vmem [#allocation2], %s617_s24 }
  0x30   : > { %s134_s22 = sshll.u32 %s127_s19, 4  ;;  %p1125_p11 = pnand %p828_p6, %p35_p8  ;;  %s1129_s22 = int_to_ptr.vmem [resolvable:$true] %s134_s22 }
  0x31   : > { %s1131_s28 = scalar_lea.sflag [#allocation3], %s123_s18  ;;  %s896_s29 = scalar_lea.hbm %s1123_s27, 4096 }
  0x32   : > { %p897_p13 = scmp.ne.s32.totalorder %s1123_s27, %s896_s29  ;;  %p898_p0 = pneg %p1125_p11 }
  0x33   : > { %s901_s6 = scalar_lea.hbm %s1300_s0, 8192  ;;  %p902_p7 = scmp.lt.u32.totalorder %s1123_s27, %s1300_s0 }
  0x34   : > { %p899_p3 = pnand %p898_p0, %p897_p13  ;;  %p903_p9 = scmp.lt.u32.totalorder %s901_s6, %s896_s29 }
  0x35   : > { %p905_p2 = scmp.lt.u32.totalorder %s896_s29, %s1123_s27 }
  0x36   : > { %p900_p5 = pneg %p899_p3  ;;  %p904_p1 = por %p903_p9, %p902_p7 }
  0x38   : > { %p906_p4 = por %p905_p2, %p904_p1 }
  0x3a   : > { %p907_p6 = pnand %p906_p4, %p900_p5 }
  0x3c   : > { %910 = shalt.err (!%p907_p6)
}
  0x3d   : > { %s911_s18 = scalar_lea.vmem %s1129_s22, 4096  ;;  %s1001_s24 = smov [#allocation2]  }
  0x3e   : > { %p912_p8 = scmp.ne.s32.totalorder %s1129_s22, %s911_s18  ;;  %s916_s25 = sshll.u32 %s1001_s24, 4  ;;  %s917_s25 = int_to_ptr.vmem [resolvable:$false] %s916_s25 }
  0x3f   : > { %s918_s26 = scalar_lea.vmem %s917_s25, 8192  ;;  %p919_p3 = scmp.lt.s32.totalorder %s1129_s22, %s917_s25 }
  0x40   : > { %p914_p10 = pnand %p912_p8, %p898_p0  ;;  %p920_p7 = scmp.lt.s32.totalorder %s918_s26, %s911_s18 }
  0x42   : > { %p915_p13 = pneg %p914_p10  ;;  %p921_p9 = por %p920_p7, %p919_p3 }
  0x44   : > { %p922_p1 = pnand %p921_p9, %p915_p13 }
  0x46   : > { %925 = shalt.err (!%p922_p1)
}
  0x47   : > { %822 = dma.hbm_to_vmem [thread:$0]  (!%p1125_p11), %s1123_s27, 4096, %s1129_s22, %s1131_s28, %s999_s4, %s999_s4, %s1000_s5  }
  0x48   : > { %p1313_p0 = scmp.ne.s32.totalorder %s1308_s17, 0 }
  0x49   : > { %s1165_s19 = sand.u32 (!%p1313_p0), 1, %s988_s10   ;;  %p1314_p5 = scmp.ne.s32.totalorder (!%p1313_p0), %s1306_s15, 0 }
  0x4a   : > { %146 = sbr.rel (%p1313_p0) target bundleno = 378 (0x17a), region = 28  ;;  %s621_s29 = sshll.u32 (!%p1313_p0), %s1165_s19, 8 }
  0x4b   : > { %s149_s30 = scalar_lea.sflag (!%p1313_p0), [#allocation3], %s1165_s19  ;;  %s1171_s23 = scalar_lea.vmem (!%p1313_p0), [#allocation2], %s621_s29 }
  0x51   : > { %971 = dma.done.wait (%p1314_p5), %s149_s30, 4096  }
  0x52   : > { %973 = vsyncadd (%p1314_p5), %s149_s30, 4294963200  ;;  %p1315_p11 = scmp.eq.s32.totalorder %s1041_s13, 0 }
  0x54   : > { %975 = dma.done.wait (%p1315_p11), [#allocation6], 2048   ;;  %p1316_p2 = pmov %p1315_p11 }
  0x55   : > { %v211_v0 = vld [vmem:[#allocation5] sm:$0xff]  ;;  %v212_v1 = vld [vmem:[#allocation5 + $0x8] sm:$0xff]  ;;  %v213_v2 = vld [vmem:[#allocation5 + $0x10] sm:$0xff]  ;;  %s1215_s15 = scalar_lea.vmem [#allocation7], %s621_s29  ;;  %s630_s17 = sshll.u32 %s1041_s13, 12 }
  0x56   : > { %977 = vsyncadd (%p1316_p2), [#allocation6], 4294965248  ;;  %v759_v3 = vpack.c.bf16 %v212_v1, %v211_v0  ;;  %v214_v4 = vld [vmem:[#allocation5 + $0x18] sm:$0xff]  ;;  %v215_v6 = vld [vmem:[#allocation5 + $0x20] sm:$0xff]  ;;  %s530_s4 = sshll.u32 %s1215_s15, 4  ;;  %s1250_s13 = scalar_lea.hbm %s1302_s2, %s630_s17  ;;  %s1252_s4 = int_to_ptr.vmem [resolvable:$true] %s530_s4 }
  0x57   : > { %v763_v5 = vpack.c.bf16 %v214_v4, %v213_v2  ;;  %v216_v7 = vld [vmem:[#allocation5 + $0x28] sm:$0xff]  ;;  %v179_v9 = vld [vmem:[%s1171_s23] sm:$0xff]  ;;  %v217_v11 = vld [vmem:[#allocation5 + $0x30] sm:$0xff]  ;;  %s517_s22 = scalar_lea.sflag [#allocation4], %s1165_s19  ;;  %s926_s28 = scalar_lea.vmem %s1252_s4, 4096 }
  0x58   : > { %760 = vmatprep.subr.bf16.mxu0 %v759_v3  ;;  %791 = vmatprep.subr.bf16.mxu1 %v759_v3  ;;  %v767_v8 = vpack.c.bf16 %v216_v7, %v215_v6  ;;  %v195_v10 = vld [vmem:[%s1171_s23 + $0x80] sm:$0xff]  ;;  %v218_v12 = vld [vmem:[#allocation5 + $0x38] sm:$0xff]  ;;  %v220_v15 = vld [vmem:[#allocation5 + $0x48] sm:$0xff]  ;;  %p927_p4 = scmp.ne.s32.totalorder %s1252_s4, %s926_s28  ;;  %s1002_s3 = smov [#allocation7]  }
  0x59   : > { %762 = vmatpush3.bf16.msra.mxu0 %v759_v3  ;;  %799 = vmatpush3.bf16.msra.mxu1 %v759_v3  ;;  %v771_v13 = vpack.c.bf16 %v218_v12, %v217_v11  ;;  %v219_v14 = vld [vmem:[#allocation5 + $0x40] sm:$0xff]  ;;  %v221_v17 = vld [vmem:[#allocation5 + $0x50] sm:$0xff]  ;;  %v222_v18 = vld [vmem:[#allocation5 + $0x58] sm:$0xff]  ;;  %s930_s6 = sshll.u32 %s1002_s3, 4  ;;  %s931_s6 = int_to_ptr.vmem [resolvable:$false] %s930_s6 }
  0x5a   : > { %764 = vmatprep.subr.bf16.mxu0 %v763_v5  ;;  %792 = vmatprep.subr.bf16.mxu1 %v763_v5  ;;  %v775_v16 = vpack.c.bf16 %v220_v15, %v219_v14  ;;  %v779_v19 = vpack.c.bf16 %v222_v18, %v221_v17  ;;  %v223_v20 = vld [vmem:[#allocation5 + $0x60] sm:$0xff]  ;;  %v224_v21 = vld [vmem:[#allocation5 + $0x68] sm:$0xff]  ;;  %v225_v23 = vld [vmem:[#allocation5 + $0x70] sm:$0xff]  ;;  %p928_p6 = pnand %p927_p4, %p1114_p12  ;;  %s932_s7 = scalar_lea.vmem %s931_s6, 8192 }
  0x5b   : > { %711 = vmatprep.mubr.f32.mxu0 %v179_v9  ;;  %735 = vmatprep.mubr.f32.mxu1 %v195_v10  ;;  %v783_v22 = vpack.c.bf16 %v224_v21, %v223_v20  ;;  %v226_v24 = vld [vmem:[#allocation5 + $0x78] sm:$0xff]  ;;  %v180_v26 = vld [vmem:[%s1171_s23 + $0x8] sm:$0xff]  ;;  %v181_v28 = vld [vmem:[%s1171_s23 + $0x10] sm:$0xff]  ;;  %p933_p10 = scmp.lt.s32.totalorder %s1252_s4, %s931_s6  ;;  %p934_p13 = scmp.lt.s32.totalorder %s932_s7, %s926_s28 }
  0x5c   : > { %v787_v25 = vpack.c.bf16 %v226_v24, %v225_v23  ;;  %v196_v27 = vld [vmem:[%s1171_s23 + $0x88] sm:$0xff]  ;;  %v197_v29 = vld [vmem:[%s1171_s23 + $0x90] sm:$0xff]  ;;  %v182_v30 = vld [vmem:[%s1171_s23 + $0x18] sm:$0xff]  ;;  %p929_p8 = pneg %p928_p6 }
  0x5d   : > { %766 = vmatpush3.bf16.msra.mxu0 %v763_v5  ;;  %800 = vmatpush3.bf16.msra.mxu1 %v763_v5  ;;  %v198_v31 = vld [vmem:[%s1171_s23 + $0x98] sm:$0xff]  ;;  %v183_v32 = vld [vmem:[%s1171_s23 + $0x20] sm:$0xff]  ;;  %v184_v34 = vld [vmem:[%s1171_s23 + $0x28] sm:$0xff]  ;;  %p935_p3 = por %p934_p13, %p933_p10 }
  0x5e   : > { %768 = vmatprep.subr.bf16.mxu0 %v767_v8  ;;  %793 = vmatprep.subr.bf16.mxu1 %v767_v8  ;;  %v199_v33 = vld [vmem:[%s1171_s23 + $0xa0] sm:$0xff]  ;;  %v200_v35 = vld [vmem:[%s1171_s23 + $0xa8] sm:$0xff]  ;;  %v185_v36 = vld [vmem:[%s1171_s23 + $0x30] sm:$0xff] }
  0x5f   : > { %v201_v37 = vld [vmem:[%s1171_s23 + $0xb0] sm:$0xff]  ;;  %v186_v38 = vld [vmem:[%s1171_s23 + $0x38] sm:$0xff]  ;;  %v187_v40 = vld [vmem:[%s1171_s23 + $0x40] sm:$0xff]  ;;  %p936_p7 = pnand %p935_p3, %p929_p8 }
  0x60   : > { %v202_v39 = vld [vmem:[%s1171_s23 + $0xb8] sm:$0xff]  ;;  %v203_v41 = vld [vmem:[%s1171_s23 + $0xc0] sm:$0xff]  ;;  %v188_v42 = vld [vmem:[%s1171_s23 + $0x48] sm:$0xff] }
  0x61   : > { %770 = vmatpush3.bf16.msra.mxu0 %v767_v8  ;;  %801 = vmatpush3.bf16.msra.mxu1 %v767_v8  ;;  %v204_v43 = vld [vmem:[%s1171_s23 + $0xc8] sm:$0xff]  ;;  %v189_v44 = vld [vmem:[%s1171_s23 + $0x50] sm:$0xff]  ;;  %v190_v46 = vld [vmem:[%s1171_s23 + $0x58] sm:$0xff] }
  0x62   : > { %772 = vmatprep.subr.bf16.mxu0 %v771_v13  ;;  %794 = vmatprep.subr.bf16.mxu1 %v771_v13  ;;  %v205_v45 = vld [vmem:[%s1171_s23 + $0xd0] sm:$0xff]  ;;  %v206_v47 = vld [vmem:[%s1171_s23 + $0xd8] sm:$0xff]  ;;  %v191_v48 = vld [vmem:[%s1171_s23 + $0x60] sm:$0xff] }
  0x63   : > { %v207_v49 = vld [vmem:[%s1171_s23 + $0xe0] sm:$0xff]  ;;  %v192_v50 = vld [vmem:[%s1171_s23 + $0x68] sm:$0xff]  ;;  %v193_v52 = vld [vmem:[%s1171_s23 + $0x70] sm:$0xff] }
  0x64   : > { %v208_v51 = vld [vmem:[%s1171_s23 + $0xe8] sm:$0xff]  ;;  %v209_v53 = vld [vmem:[%s1171_s23 + $0xf0] sm:$0xff]  ;;  %v194_v54 = vld [vmem:[%s1171_s23 + $0x78] sm:$0xff] }
  0x65   : > { %774 = vmatpush3.bf16.msra.mxu0 %v771_v13  ;;  %802 = vmatpush3.bf16.msra.mxu1 %v771_v13  ;;  %v210_v55 = vld [vmem:[%s1171_s23 + $0xf8] sm:$0xff] }
  0x66   : > { %776 = vmatprep.subr.bf16.mxu0 %v775_v16  ;;  %795 = vmatprep.subr.bf16.mxu1 %v775_v16 }
  0x69   : > { %778 = vmatpush3.bf16.msra.mxu0 %v775_v16  ;;  %803 = vmatpush3.bf16.msra.mxu1 %v775_v16 }
  0x6a   : > { %780 = vmatprep.subr.bf16.mxu0 %v779_v19  ;;  %796 = vmatprep.subr.bf16.mxu1 %v779_v19 }
  0x6d   : > { %782 = vmatpush3.bf16.msra.mxu0 %v779_v19  ;;  %804 = vmatpush3.bf16.msra.mxu1 %v779_v19 }
  0x6e   : > { %784 = vmatprep.subr.bf16.mxu0 %v783_v22  ;;  %797 = vmatprep.subr.bf16.mxu1 %v783_v22 }
  0x71   : > { %786 = vmatpush3.bf16.msra.mxu0 %v783_v22  ;;  %805 = vmatpush3.bf16.msra.mxu1 %v783_v22 }
  0x72   : > { %788 = vmatprep.subr.bf16.mxu0 %v787_v25  ;;  %798 = vmatprep.subr.bf16.mxu1 %v787_v25 }
  0x75   : > { %790 = vmatpush3.bf16.msra.mxu0 %v787_v25  ;;  %806 = vmatpush3.bf16.msra.mxu1 %v787_v25 }
  0x78   : > { %712 = vmatmul.mubr.f32.vlgmr.msra.gmra.mrb[0].mxu0 %v180_v26  ;;  %736 = vmatmul.mubr.f32.vlgmr.msra.gmra.mrb[0].mxu1 %v196_v27 }
  0x79   : > { %714 = vmatprep.mubr.f32.mxu0 %v181_v28  ;;  %738 = vmatprep.mubr.f32.mxu1 %v197_v29 }
  0x7c   : > { %715 = vmatmul.mubr.f32.gmra.mrb[2].mxu0 %v182_v30  ;;  %739 = vmatmul.mubr.f32.gmra.mrb[2].mxu1 %v198_v31 }
  0x7d   : > { %717 = vmatprep.mubr.f32.mxu0 %v183_v32  ;;  %741 = vmatprep.mubr.f32.mxu1 %v199_v33 }
  0x80   : > { %718 = vmatmul.mubr.f32.gmra.mrb[4].mxu0 %v184_v34  ;;  %742 = vmatmul.mubr.f32.gmra.mrb[4].mxu1 %v200_v35 }
  0x81   : > { %720 = vmatprep.mubr.f32.mxu0 %v185_v36  ;;  %744 = vmatprep.mubr.f32.mxu1 %v201_v37 }
  0x84   : > { %721 = vmatmul.mubr.f32.gmra.mrb[6].mxu0 %v186_v38  ;;  %745 = vmatmul.mubr.f32.gmra.mrb[6].mxu1 %v202_v39 }
  0x85   : > { %723 = vmatprep.mubr.f32.mxu0 %v187_v40  ;;  %747 = vmatprep.mubr.f32.mxu1 %v203_v41 }
  0x88   : > { %724 = vmatmul.mubr.f32.gmra.mrb[8].mxu0 %v188_v42  ;;  %748 = vmatmul.mubr.f32.gmra.mrb[8].mxu1 %v204_v43 }
  0x89   : > { %726 = vmatprep.mubr.f32.mxu0 %v189_v44  ;;  %750 = vmatprep.mubr.f32.mxu1 %v205_v45 }
  0x8c   : > { %727 = vmatmul.mubr.f32.gmra.mrb[10].mxu0 %v190_v46  ;;  %751 = vmatmul.mubr.f32.gmra.mrb[10].mxu1 %v206_v47 }
  0x8d   : > { %729 = vmatprep.mubr.f32.mxu0 %v191_v48  ;;  %753 = vmatprep.mubr.f32.mxu1 %v207_v49 }
  0x90   : > { %730 = vmatmul.mubr.f32.gmra.mrb[12].mxu0 %v192_v50  ;;  %754 = vmatmul.mubr.f32.gmra.mrb[12].mxu1 %v208_v51 }
  0x91   : > { %732 = vmatprep.mubr.f32.mxu0 %v193_v52  ;;  %756 = vmatprep.mubr.f32.mxu1 %v209_v53 }
  0x94   : > { %733 = vmatmul.mubr.f32.gmra.mrb[14].mxu0 %v194_v54  ;;  %757 = vmatmul.mubr.f32.gmra.mrb[14].mxu1 %v210_v55 }
 0x14b   : > { %v713_v56 = vpop.f32.mrb[0].mxu0  ;;  %v737_v57 = vpop.f32.mrb[0].mxu1 }
 0x14c   : > { %v453_v58 = vmax.f32 %v713_v56, 0.0  ;;  %v469_v59 = vmax.f32 %v737_v57, 0.0  ;;  %v293_v60 = vpop.f32.mrb[1].mxu0  ;;  %v373_v61 = vpop.f32.mrb[1].mxu1 }
 0x14d   : > { %v452_v62 = vmax.f32 %v293_v60, 0.0  ;;  %v468_v63 = vmax.f32 %v373_v61, 0.0 }
 0x14e   : > { %485 = vst [vmem:[%s1215_s15 + $0x8] sm:$0xff] %v453_v58  ;;  %501 = vst [vmem:[%s1215_s15 + $0x88] sm:$0xff] %v469_v59 }
 0x14f   : > { %484 = vst [vmem:[%s1215_s15] sm:$0xff] %v452_v62  ;;  %500 = vst [vmem:[%s1215_s15 + $0x80] sm:$0xff] %v468_v63  ;;  %v716_v0 = vpop.f32.mrb[2].mxu0  ;;  %v740_v1 = vpop.f32.mrb[2].mxu1 }
 0x150   : > { %v455_v2 = vmax.f32 %v716_v0, 0.0  ;;  %v471_v3 = vmax.f32 %v740_v1, 0.0  ;;  %v303_v4 = vpop.f32.mrb[3].mxu0  ;;  %v383_v5 = vpop.f32.mrb[3].mxu1 }
 0x151   : > { %v454_v6 = vmax.f32 %v303_v4, 0.0  ;;  %v470_v7 = vmax.f32 %v383_v5, 0.0 }
 0x152   : > { %487 = vst [vmem:[%s1215_s15 + $0x18] sm:$0xff] %v455_v2  ;;  %503 = vst [vmem:[%s1215_s15 + $0x98] sm:$0xff] %v471_v3 }
 0x153   : > { %486 = vst [vmem:[%s1215_s15 + $0x10] sm:$0xff] %v454_v6  ;;  %502 = vst [vmem:[%s1215_s15 + $0x90] sm:$0xff] %v470_v7  ;;  %v719_v8 = vpop.f32.mrb[4].mxu0  ;;  %v743_v9 = vpop.f32.mrb[4].mxu1 }
 0x154   : > { %v457_v10 = vmax.f32 %v719_v8, 0.0  ;;  %v473_v11 = vmax.f32 %v743_v9, 0.0  ;;  %v313_v12 = vpop.f32.mrb[5].mxu0  ;;  %v393_v13 = vpop.f32.mrb[5].mxu1 }
 0x155   : > { %v456_v14 = vmax.f32 %v313_v12, 0.0  ;;  %v472_v15 = vmax.f32 %v393_v13, 0.0 }
 0x156   : > { %489 = vst [vmem:[%s1215_s15 + $0x28] sm:$0xff] %v457_v10  ;;  %505 = vst [vmem:[%s1215_s15 + $0xa8] sm:$0xff] %v473_v11 }
 0x157   : > { %488 = vst [vmem:[%s1215_s15 + $0x20] sm:$0xff] %v456_v14  ;;  %504 = vst [vmem:[%s1215_s15 + $0xa0] sm:$0xff] %v472_v15  ;;  %v722_v16 = vpop.f32.mrb[6].mxu0  ;;  %v746_v17 = vpop.f32.mrb[6].mxu1 }
 0x158   : > { %v459_v18 = vmax.f32 %v722_v16, 0.0  ;;  %v475_v19 = vmax.f32 %v746_v17, 0.0  ;;  %v323_v20 = vpop.f32.mrb[7].mxu0  ;;  %v403_v21 = vpop.f32.mrb[7].mxu1 }
 0x159   : > { %v458_v22 = vmax.f32 %v323_v20, 0.0  ;;  %v474_v23 = vmax.f32 %v403_v21, 0.0 }
 0x15a   : > { %491 = vst [vmem:[%s1215_s15 + $0x38] sm:$0xff] %v459_v18  ;;  %507 = vst [vmem:[%s1215_s15 + $0xb8] sm:$0xff] %v475_v19 }
 0x15b   : > { %490 = vst [vmem:[%s1215_s15 + $0x30] sm:$0xff] %v458_v22  ;;  %506 = vst [vmem:[%s1215_s15 + $0xb0] sm:$0xff] %v474_v23  ;;  %v725_v24 = vpop.f32.mrb[8].mxu0  ;;  %v749_v25 = vpop.f32.mrb[8].mxu1 }
 0x15c   : > { %v461_v26 = vmax.f32 %v725_v24, 0.0  ;;  %v477_v27 = vmax.f32 %v749_v25, 0.0  ;;  %v333_v28 = vpop.f32.mrb[9].mxu0  ;;  %v413_v29 = vpop.f32.mrb[9].mxu1 }
 0x15d   : > { %v460_v30 = vmax.f32 %v333_v28, 0.0  ;;  %v476_v31 = vmax.f32 %v413_v29, 0.0 }
 0x15e   : > { %493 = vst [vmem:[%s1215_s15 + $0x48] sm:$0xff] %v461_v26  ;;  %509 = vst [vmem:[%s1215_s15 + $0xc8] sm:$0xff] %v477_v27 }
 0x15f   : > { %492 = vst [vmem:[%s1215_s15 + $0x40] sm:$0xff] %v460_v30  ;;  %508 = vst [vmem:[%s1215_s15 + $0xc0] sm:$0xff] %v476_v31  ;;  %v728_v32 = vpop.f32.mrb[10].mxu0  ;;  %v752_v33 = vpop.f32.mrb[10].mxu1 }
 0x160   : > { %v463_v34 = vmax.f32 %v728_v32, 0.0  ;;  %v479_v35 = vmax.f32 %v752_v33, 0.0  ;;  %v343_v36 = vpop.f32.mrb[11].mxu0  ;;  %v423_v37 = vpop.f32.mrb[11].mxu1 }
 0x161   : > { %v462_v38 = vmax.f32 %v343_v36, 0.0  ;;  %v478_v39 = vmax.f32 %v423_v37, 0.0 }
 0x162   : > { %495 = vst [vmem:[%s1215_s15 + $0x58] sm:$0xff] %v463_v34  ;;  %511 = vst [vmem:[%s1215_s15 + $0xd8] sm:$0xff] %v479_v35 }
 0x163   : > { %494 = vst [vmem:[%s1215_s15 + $0x50] sm:$0xff] %v462_v38  ;;  %510 = vst [vmem:[%s1215_s15 + $0xd0] sm:$0xff] %v478_v39  ;;  %v731_v40 = vpop.f32.mrb[12].mxu0  ;;  %v755_v41 = vpop.f32.mrb[12].mxu1 }
 0x164   : > { %v465_v42 = vmax.f32 %v731_v40, 0.0  ;;  %v481_v43 = vmax.f32 %v755_v41, 0.0  ;;  %v353_v44 = vpop.f32.mrb[13].mxu0  ;;  %v433_v45 = vpop.f32.mrb[13].mxu1 }
 0x165   : > { %v464_v46 = vmax.f32 %v353_v44, 0.0  ;;  %v480_v47 = vmax.f32 %v433_v45, 0.0 }
 0x166   : > { %497 = vst [vmem:[%s1215_s15 + $0x68] sm:$0xff] %v465_v42  ;;  %513 = vst [vmem:[%s1215_s15 + $0xe8] sm:$0xff] %v481_v43 }
 0x167   : > { %496 = vst [vmem:[%s1215_s15 + $0x60] sm:$0xff] %v464_v46  ;;  %512 = vst [vmem:[%s1215_s15 + $0xe0] sm:$0xff] %v480_v47  ;;  %v734_v48 = vpop.f32.mrb[14].mxu0  ;;  %v758_v49 = vpop.f32.mrb[14].mxu1 }
 0x168   : > { %v467_v50 = vmax.f32 %v734_v48, 0.0  ;;  %v483_v51 = vmax.f32 %v758_v49, 0.0  ;;  %v363_v52 = vpop.f32.mrb[15].mxu0  ;;  %v443_v53 = vpop.f32.mrb[15].mxu1 }
 0x169   : > { %v466_v54 = vmax.f32 %v363_v52, 0.0  ;;  %v482_v55 = vmax.f32 %v443_v53, 0.0 }
 0x16a   : > { %499 = vst [vmem:[%s1215_s15 + $0x78] sm:$0xff] %v467_v50  ;;  %515 = vst [vmem:[%s1215_s15 + $0xf8] sm:$0xff] %v483_v51 }
 0x16b   : > { %498 = vst [vmem:[%s1215_s15 + $0x70] sm:$0xff] %v466_v54  ;;  %514 = vst [vmem:[%s1215_s15 + $0xf0] sm:$0xff] %v482_v55 }
 0x16c   : > { %939 = shalt.err (!%p936_p7)
}
 0x16d   : > { %s940_s20 = scalar_lea.hbm %s1250_s13, 4096  ;;  %s944_s25 = scalar_lea.hbm %s1302_s2, 8192 }
 0x16e   : > { %p941_p9 = scmp.ne.s32.totalorder %s1250_s13, %s940_s20  ;;  %p945_p5 = scmp.lt.u32.totalorder %s1250_s13, %s1302_s2 }
 0x16f   : > { %p946_p11 = scmp.lt.u32.totalorder %s944_s25, %s940_s20  ;;  %p948_p4 = scmp.lt.u32.totalorder %s940_s20, %s1250_s13 }
 0x170   : > { %p942_p1 = pnand %p941_p9, %p1114_p12 }
 0x171   : > { %p947_p2 = por %p946_p11, %p945_p5 }
 0x172   : > { %p943_p0 = pneg %p942_p1 }
 0x173   : > { %p949_p6 = por %p948_p4, %p947_p2 }
 0x175   : > { %p950_p8 = pnand %p949_p6, %p943_p0 }
 0x177   : > { %953 = shalt.err (!%p950_p8)
}
 0x178   : > { %s1003_s30 = smov 128   ;;  %s1004_s23 = smov 8  }
 0x179   : > { %813 = dma.vmem_to_hbm [thread:$0]  (%p1114_p12), %s1252_s4, 4096, %s1250_s13, %s517_s22, %s1003_s30, %s1003_s30, %s1004_s23  }
 0x17a PF: > { %s545_s15 = sand.u32 1, %s984_s9   ;;  %p1317_p10 = scmp.ne.s32.totalorder %s1307_s16, 0 }
 0x17b   : > { %p1318_p13 = scmp.ge.s32.totalorder %s996_s12, 2  ;;  %s546_s17 = scalar_lea.sflag [#allocation4], %s545_s15 }
 0x17d   : > { %p824_p3 = pnand %p1318_p13, %p1317_p10 }
 0x17f   : > { %979 = dma.done.wait (!%p824_p3), %s546_s17, 4096  }
 0x180   : > { %981 = vsyncadd (!%p824_p3), %s546_s17, 4294963200  ;;  %p16_p7 = scmp.ge.s32.totalorder %s1076_s21, 4   ;;  %s1319_s9 = smov %s988_s10 }
 0x181   : > { %s1320_s10 = smov %s992_s11  ;;  %s1321_s11 = smov %s1110_s8 }
 0x182   : > { %s1322_s12 = smov %s1076_s21  ;;  %18 = sbr.rel (!%p16_p7) target bundleno = 6 (0x6), region = 77 }
 0x189   :  { %551 = vsyncpa [#allocation3], 1 }
 0x18a   :  { %553 = vsyncpa [#allocation3 + $0x1], 1 }
 0x18b   :  { %554 = vsyncpa [#allocation6], 1 }
 0x18c   :  { %555 = vsyncpa [#allocation4], 1 }
 0x18d   :  { %557 = vsyncpa [#allocation4 + $0x1], 1 }

</bundles_post_ra>
